<compile_context>
chip_gen: v5e
topology: v5e:2x2
jax: 0.10.0
libtpu: 0.0.40
codegen_flags: <defaults>
</compile_context>

<pallas_src>
import functools
import math

import jax
import jax.numpy as jnp
from jax.experimental import pallas as pl
from jax.experimental.pallas import tpu as pltpu


def _round_up(x, m):
    return ((x + m - 1) // m) * m


def _pick_vmem_limit():
    """Scoped-VMEM cap gated on the chip generation.

    v7x has only 64 MiB/TC physical VMEM -> cap at 48 MiB (leave ~25% headroom
    for compiler temps / double buffers).  v5e/v6e have 128 MiB -> ~96 MiB.
    """
    phys = 128 * 1024 * 1024
    try:
        info = pltpu.get_tpu_info()
        phys = int(getattr(info, "vmem_capacity_bytes", phys)) or phys
    except Exception:
        pass
    return min((phys * 3) // 4, 100 * 1024 * 1024)


# -----------------------------------------------------------------------------
# Kernel 1: head-fused feature transform + per-node score projections.
# -----------------------------------------------------------------------------
def fused_fc_kernel(h_ref, w_ref, p_ref, whb_ref, sproj_ref):
    h = h_ref[...]                                           # [TILE_M, in_dim]
    # One wide lane-dense MXU matmul for all heads at once.
    wh = jnp.dot(h, w_ref[...], preferred_element_type=jnp.float32)
    whb_ref[...] = wh.astype(jnp.bfloat16)                   # bf16 MXU operand
    # Per-node score projections: [TILE_M, 2H] = h @ [proj_src | proj_dst]
    # (mathematically identical to (h@W_h)@a_*, avoids the f32 Wh round trip).
    sproj_ref[...] = jnp.dot(h, p_ref[...], preferred_element_type=jnp.float32)


# -----------------------------------------------------------------------------
# Kernel 2: (row, column)-tiled attention with online softmax accumulation.
# -----------------------------------------------------------------------------
def gat_attention_kernel(adj_ref, ssrc_ref, sdstt_ref, fill_ref, whb_ref,
                         out_ref, m_sc, l_sc, acc_sc, *, num_heads, out_dim):
    c = pl.program_id(1)
    nc = pl.num_programs(1)

    @pl.when(c == 0)
    def _init():
        m_sc[...] = jnp.full_like(m_sc, -jnp.inf)
        l_sc[...] = jnp.zeros_like(l_sc)
        acc_sc[...] = jnp.zeros_like(acc_sc)

    edge = adj_ref[...] > 0                                  # [TILE_M, TILE_N]

    for hd in range(num_heads):                              # static unroll
        lo, hi = hd * out_dim, (hd + 1) * out_dim
        s1 = ssrc_ref[:, hd:hd + 1]                          # [TILE_M, 1]  Wh_i . a_src
        s2 = sdstt_ref[hd:hd + 1, :]                         # [1, TILE_N]  Wh_j . a_dst
        fill = fill_ref[hd:hd + 1, :]                        # [1, TILE_N]  non-edge / pad

        # Single select: edges -> s1+s2, non-edges -> attn_fc(-9e15 vector),
        # padded j-columns -> -1e30 (pre-baked into the fill row on the host).
        scores = jnp.where(edge, s1 + s2, fill)
        e = jnp.where(scores >= 0.0, scores, 0.2 * scores)   # leaky_relu(0.2)

        # Online softmax update (normalization deferred to the finalize step).
        m_prev = m_sc[:, hd:hd + 1]
        m_new = jnp.maximum(m_prev, jnp.max(e, axis=1, keepdims=True))
        corr = jnp.exp(m_prev - m_new)
        p = jnp.exp(e - m_new)

        l_sc[:, hd:hd + 1] = corr * l_sc[:, hd:hd + 1] + jnp.sum(
            p, axis=1, keepdims=True)
        acc_sc[:, lo:hi] = corr * acc_sc[:, lo:hi] + jnp.dot(
            p.astype(jnp.bfloat16), whb_ref[:, lo:hi],
            preferred_element_type=jnp.float32)
        m_sc[:, hd:hd + 1] = m_new

    @pl.when(c == nc - 1)
    def _finalize():
        for hd in range(num_heads):
            lo, hi = hd * out_dim, (hd + 1) * out_dim
            h_out = acc_sc[:, lo:hi] * pl.reciprocal(l_sc[:, hd:hd + 1],
                                                     approx=True)
            # ELU: exp(x)-1 on the negative branch (single EUP op); the exp
            # overflow on the discarded positive branch is inf, not NaN, so
            # the select stays safe.
            elu = jnp.where(h_out > 0.0, h_out, jnp.exp(h_out) - 1.0)
            out_ref[:, lo:hi] = elu.astype(out_ref.dtype)


# -----------------------------------------------------------------------------
# Wrapper
# -----------------------------------------------------------------------------
def multi_head_gat(h, adj, fc_w_t, a_src, a_dst, *, tile_m=256, tile_n=512):
    """Multi-head GAT forward (concat=True).

    h       : [N, in_dim] float32 node features
    adj     : [N, N] adjacency (entry > 0 means directed edge i -> j)
    fc_w_t  : [H, in_dim, out_dim]  per-head fc.weight, pre-transposed
    a_src   : [H, out_dim]  first half of attn_fc.weight (applies to Wh[i])
    a_dst   : [H, out_dim]  second half of attn_fc.weight (applies to Wh[j])
    returns : [N, H*out_dim] == torch.cat([elu(head_k(h)) for k], dim=1)
    """
    n, in_dim = h.shape
    num_heads, _, out_dim = fc_w_t.shape
    hd_dim = num_heads * out_dim

    # Clamp tiles for small graphs, then pad N to a multiple of both tiles.
    n_pad0 = _round_up(n, 128)
    tile_m = min(tile_m, n_pad0)
    tile_n = min(tile_n, n_pad0)
    assert tile_m % 8 == 0 and tile_n % 128 == 0, (tile_m, tile_n)
    n_pad = _round_up(_round_up(n, tile_m), tile_n)
    assert n_pad % tile_m == 0 and n_pad % tile_n == 0, (n_pad, tile_m, tile_n)
    n_row, n_col = n_pad // tile_m, n_pad // tile_n

    # ---- one-time parameter / layout prep (load-time work) ------------------
    # Head-concatenated fc weight: column h*D+d == fc_w_t[h, :, d].
    w_all = jnp.transpose(fc_w_t, (1, 0, 2)).reshape(in_dim, hd_dim)
    # Fused score projections: (h @ W_h) . a = h . (W_h @ a).
    proj_src = jnp.einsum('hkd,hd->kh', fc_w_t, a_src)        # [in_dim, H]
    proj_dst = jnp.einsum('hkd,hd->kh', fc_w_t, a_dst)        # [in_dim, H]
    proj_both = jnp.concatenate([proj_src, proj_dst], axis=1) # [in_dim, 2H]

    h_p = h if n_pad == n else jnp.zeros((n_pad, in_dim), h.dtype).at[:n].set(h)
    adj_i8 = (adj > 0).astype(jnp.int8)                        # int8: 4x smaller
    if n_pad != n:
        adj_i8 = jnp.zeros((n_pad, n_pad), jnp.int8).at[:n, :n].set(adj_i8)

    # attn_fc applied to the constant -9e15 non-edge vector; padded j-columns
    # (not real nodes) get a hard -1e30.  Precomputed per head: [H, N_pad].
    masked_h = -9000000000000000.0 * (jnp.sum(a_src, axis=1) +
                                      jnp.sum(a_dst, axis=1))  # [H]
    col_real = jnp.arange(n_pad) < n
    fill_rows = jnp.where(col_real[None, :], masked_h[:, None],
                          -1e30).astype(jnp.float32)           # [H, N_pad]

    vmem_cap = _pick_vmem_limit()

    # ---- Kernel 1: whb (bf16) + score projections (f32). --------------------
    whb, sproj = pl.pallas_call(
        fused_fc_kernel,
        out_shape=(jax.ShapeDtypeStruct((n_pad, hd_dim), jnp.bfloat16),
                   jax.ShapeDtypeStruct((n_pad, 2 * num_heads), jnp.float32)),
        grid_spec=pltpu.PrefetchScalarGridSpec(
            num_scalar_prefetch=0,
            grid=(n_pad // tile_m,),
            in_specs=[
                pl.BlockSpec((tile_m, in_dim), lambda r: (r, 0)),
                pl.BlockSpec((in_dim, hd_dim), lambda r: (0, 0)),
                pl.BlockSpec((in_dim, 2 * num_heads), lambda r: (0, 0)),
            ],
            out_specs=[pl.BlockSpec((tile_m, hd_dim), lambda r: (r, 0)),
                       pl.BlockSpec((tile_m, 2 * num_heads), lambda r: (r, 0))],
        ),
        compiler_params=pltpu.CompilerParams(
            dimension_semantics=("parallel",),
            vmem_limit_bytes=vmem_cap),
    )(h_p, w_all, proj_both)

    s_src = sproj[:, :num_heads]                        # [N_pad, H]
    s_dst_t = jnp.transpose(sproj[:, num_heads:])       # [H, N_pad] (tiny XLA op)

    # ---- Kernel 2: tiled attention, online softmax, concat-layout output. ---
    kernel = functools.partial(gat_attention_kernel,
                               num_heads=num_heads, out_dim=out_dim)
    out = pl.pallas_call(
        kernel,
        out_shape=jax.ShapeDtypeStruct((n_pad, hd_dim), jnp.float32),
        grid_spec=pltpu.PrefetchScalarGridSpec(
            num_scalar_prefetch=0,
            grid=(n_row, n_col),
            in_specs=[
                pl.BlockSpec((tile_m, tile_n), lambda r, c: (r, c)),      # adj
                pl.BlockSpec((tile_m, num_heads), lambda r, c: (r, 0)),   # s_src
                pl.BlockSpec((num_heads, tile_n), lambda r, c: (0, c)),   # s_dst^T
                pl.BlockSpec((num_heads, tile_n), lambda r, c: (0, c)),   # fill rows
                pl.BlockSpec((tile_n, hd_dim), lambda r, c: (c, 0)),      # Wh bf16
            ],
            out_specs=pl.BlockSpec((tile_m, hd_dim), lambda r, c: (r, 0)),
            scratch_shapes=[
                pltpu.VMEM((tile_m, num_heads), jnp.float32),   # running max
                pltpu.VMEM((tile_m, num_heads), jnp.float32),   # running denom
                pltpu.VMEM((tile_m, hd_dim), jnp.float32),      # running acc
            ],
        ),
        compiler_params=pltpu.CompilerParams(
            dimension_semantics=("parallel", "arbitrary"),
            vmem_limit_bytes=vmem_cap),
    )(adj_i8, s_src, s_dst_t, fill_rows, whb)

    return out[:n] if n_pad != n else out


def reference_multi_head_gat(h, adj, fc_w_t, a_src, a_dst):
    """Pure-JAX f32 reference mirroring the PyTorch forward (eval-mode dropout)."""
    outs = []
    for hd in range(fc_w_t.shape[0]):
        Wh = h @ fc_w_t[hd]                                   # [N, D]
        s1 = Wh @ a_src[hd]                                   # [N]
        s2 = Wh @ a_dst[hd]                                   # [N]
        masked = -9000000000000000.0 * (jnp.sum(a_src[hd]) + jnp.sum(a_dst[hd]))
        scores = jnp.where(adj > 0.0, s1[:, None] + s2[None, :], masked)
        e = jnp.where(scores >= 0.0, scores, 0.2 * scores)
        alpha = jax.nn.softmax(e, axis=1)
        h_out = alpha @ Wh
        outs.append(jnp.where(h_out > 0.0, h_out, jnp.expm1(h_out)))
    return jnp.concatenate(outs, axis=1)


if __name__ == "__main__":
    # Small but non-trivial: N is NOT a multiple of the tiles, so the padding
    # path is exercised, and tile_m = tile_n = 128 gives a 2x2 grid so the
    # online-softmax accumulation across column tiles is exercised too.
    N, in_dim, out_dim, num_heads = 200, 64, 128, 2

    key = jax.random.PRNGKey(0)
    k_h, k_w, k_a = jax.random.split(key, 3)

    # Node features.
    h = jax.random.normal(k_h, (N, in_dim), dtype=jnp.float32)

    # Deterministic small graph (stand-in for `kg`): ring + self loops, symmetric.
    eye = jnp.eye(N, dtype=jnp.float32)
    ring = jnp.roll(eye, 1, axis=1)
    adj = jnp.clip(eye + ring + ring.T, 0.0, 1.0)

    # Xavier-normal init with gain = calculate_gain('relu') = sqrt(2).
    gain = math.sqrt(2.0)
    fc_std = gain * math.sqrt(2.0 / (in_dim + out_dim))
    attn_std = gain * math.sqrt(2.0 / (2 * out_dim + 1))

    # fc.weight is [out_dim, in_dim] in torch; store transposed for h @ W^T.
    fc_w_t = fc_std * jax.random.normal(
        k_w, (num_heads, in_dim, out_dim), dtype=jnp.float32)
    attn_w = attn_std * jax.random.normal(
        k_a, (num_heads, 2 * out_dim), dtype=jnp.float32)
    a_src = attn_w[:, :out_dim]          # acts on Wh[i]
    a_dst = attn_w[:, out_dim:]          # acts on Wh[j]

    out = multi_head_gat(h, adj, fc_w_t, a_src, a_dst, tile_m=128, tile_n=128)
    out = jax.block_until_ready(out)

    ref = reference_multi_head_gat(h, adj, fc_w_t, a_src, a_dst)
    assert out.shape == (N, num_heads * out_dim), out.shape
    # bf16 MXU operands for the alpha @ Wh contraction + approximate reciprocal
    # -> compare at bf16-level tolerance (score/softmax path stays f32).
    max_err = float(jnp.max(jnp.abs(out - ref)))
    assert jnp.allclose(out, ref, rtol=2e-2, atol=2e-2), max_err

    print("KERNEL_OK")
</pallas_src>

<mosaic_0001>
module attributes {stable_mosaic.version = 11 : i64} {
  func.func @fused_fc_kernel(%arg0: i32, %arg1: memref<128x64xf32, #tpu.memory_space<vmem>>, %arg2: memref<64x256xf32, #tpu.memory_space<vmem>>, %arg3: memref<64x4xf32, #tpu.memory_space<vmem>>, %arg4: memref<128x256xbf16, #tpu.memory_space<vmem>>, %arg5: memref<128x4xf32, #tpu.memory_space<vmem>>) attributes {dimension_semantics = [#tpu.dimension_semantics<parallel>], iteration_bounds = array<i64: 2>, scalar_prefetch = 0 : i64, scratch_operands = 0 : i64, tpu.core_type = #tpu.core_type<tc>, window_params = [{transform_indices = @transform_0, window_bounds = array<i64: 128, 64>}, {pipeline_mode = #tpu.pipeline_mode<synchronous>, transform_indices = @transform_1, window_bounds = array<i64: 64, 256>}, {pipeline_mode = #tpu.pipeline_mode<synchronous>, transform_indices = @transform_2, window_bounds = array<i64: 64, 4>}, {transform_indices = @transform_3, window_bounds = array<i64: 128, 256>}, {transform_indices = @transform_4, window_bounds = array<i64: 128, 4>}]} {
    %c0 = arith.constant 0 : index
    %c0_0 = arith.constant 0 : index
    %0 = vector.load %arg1[%c0, %c0_0] : memref<128x64xf32, #tpu.memory_space<vmem>>, vector<128x64xf32>
    %c0_1 = arith.constant 0 : index
    %c0_2 = arith.constant 0 : index
    %1 = vector.load %arg2[%c0_1, %c0_2] : memref<64x256xf32, #tpu.memory_space<vmem>>, vector<64x256xf32>
    %cst = arith.constant dense<0.000000e+00> : vector<128x256xf32>
    %2 = tpu.matmul %0, %1, %cst {dimension_numbers = #tpu.dot_dimension_numbers<[1], [0], [0], [1], [0, 0, 1, 1], [], []>} : vector<128x64xf32>, vector<64x256xf32>, vector<128x256xf32> -> vector<128x256xf32>
    %3 = arith.truncf %2 : vector<128x256xf32> to vector<128x256xbf16>
    %c0_3 = arith.constant 0 : index
    %c0_4 = arith.constant 0 : index
    %4 = vector.load %arg4[%c0_3, %c0_4] : memref<128x256xbf16, #tpu.memory_space<vmem>>, vector<128x256xbf16>
    tpu.vector_store %arg4[%c0_3, %c0_4], %3 {strides = array<i32>} : memref<128x256xbf16, #tpu.memory_space<vmem>>, vector<128x256xbf16>,
    %c0_5 = arith.constant 0 : index
    %c0_6 = arith.constant 0 : index
    %5 = vector.load %arg3[%c0_5, %c0_6] : memref<64x4xf32, #tpu.memory_space<vmem>>, vector<64x4xf32>
    %cst_7 = arith.constant dense<0.000000e+00> : vector<128x4xf32>
    %6 = tpu.matmul %0, %5, %cst_7 {dimension_numbers = #tpu.dot_dimension_numbers<[1], [0], [0], [1], [0, 0, 1, 1], [], []>} : vector<128x64xf32>, vector<64x4xf32>, vector<128x4xf32> -> vector<128x4xf32>
    %c0_8 = arith.constant 0 : index
    %c0_9 = arith.constant 0 : index
    %7 = vector.load %arg5[%c0_8, %c0_9] : memref<128x4xf32, #tpu.memory_space<vmem>>, vector<128x4xf32>
    tpu.vector_store %arg5[%c0_8, %c0_9], %6 {strides = array<i32>} : memref<128x4xf32, #tpu.memory_space<vmem>>, vector<128x4xf32>,
    return
  }
  func.func @transform_0(%arg0: i32) -> (i32, i32) {
    %c0_i32 = arith.constant 0 : i32
    %c0_i32_0 = arith.constant 0 : i32
    return %arg0, %c0_i32 : i32, i32
  }
  func.func @transform_1(%arg0: i32) -> (i32, i32) {
    %c0_i32 = arith.constant 0 : i32
    %c0_i32_0 = arith.constant 0 : i32
    %c0_i32_1 = arith.constant 0 : i32
    return %c0_i32, %c0_i32_0 : i32, i32
  }
  func.func @transform_2(%arg0: i32) -> (i32, i32) {
    %c0_i32 = arith.constant 0 : i32
    %c0_i32_0 = arith.constant 0 : i32
    %c0_i32_1 = arith.constant 0 : i32
    return %c0_i32, %c0_i32_0 : i32, i32
  }
  func.func @transform_3(%arg0: i32) -> (i32, i32) {
    %c0_i32 = arith.constant 0 : i32
    %c0_i32_0 = arith.constant 0 : i32
    return %arg0, %c0_i32 : i32, i32
  }
  func.func @transform_4(%arg0: i32) -> (i32, i32) {
    %c0_i32 = arith.constant 0 : i32
    %c0_i32_0 = arith.constant 0 : i32
    return %arg0, %c0_i32 : i32, i32
  }
}

</mosaic_0001>

<bundles_post_ra>
// kernel: tpu_custom_call.1
= control target key start
LH: loop header
LB: loop body
LE: loop exit
PB: predicated region body
PF: predicated region fallthrough
CT: control target
= control target key end

     0   :  { %10 = vsyncpa [#allocation3], 0  ;;  %s1198_s0 = inlined_call_operand.vmem [shape: f32[256,64], index: 0, kind: input, shape index: {}]   ;;  %s1199_s1 = inlined_call_operand.vmem [shape: f32[64,256], index: 1, kind: input, shape index: {}]   ;;  %s1200_s2 = inlined_call_operand.vmem [shape: f32[64,4], index: 2, kind: input, shape index: {}]   ;;  %s1201_s3 = inlined_call_operand.hbm [shape: bf16[256,256], index: 3, kind: output, shape index: {0}]   ;;  %s1202_s4 = inlined_call_operand.vmem [shape: f32[256,4], index: 4, kind: output, shape index: {1}]  }
   0x1   :  { %12 = vsyncpa [#allocation3 + $0x1], 0  ;;  %s880_s15 = smov 0   ;;  %s882_s16 = smov 0  }
   0x2   :  { %s884_s17 = smov 0   ;;  %s886_s18 = smov 0  }
   0x3 LB: > { %s901_s19 = sadd.s32 4294967295, %s851_s18   ;;  %s659_s20 = sadd.s32 4294967294, %s851_s18   ;;  %s851_s18 = sphi %s886_s18, %s1208_s18   ;;  %s847_s17 = sphi %s884_s17, %s1207_s17   ;;  %s843_s16 = sphi %s882_s16, %s1206_s16   ;;  %s839_s15 = sphi %s880_s15, %s1205_s15  }
   0x4   : > { %s905_s21 = sadd.s32 1, %s851_s18   ;;  %s93_s22 = sadd.s32 1, %s847_s17 }
   0x5   : > { %s90_s23 = ssub.s32 %s851_s18, %s905_s21  ;;  %p103_p0 = scmp.ne.s32.totalorder %s847_s17, %s843_s16 }
   0x6   : > { %p91_p1 = scmp.eq.s32.totalorder %s90_s23, 0  ;;  %p104_p2 = scmp.eq.s32.totalorder %s901_s19, 1 }
   0x7   : > { %p109_p3 = scmp.ne.s32.totalorder %s843_s16, %s839_s15  ;;  %p110_p4 = scmp.eq.s32.totalorder %s659_s20, 1 }
   0x8   : > { %s916_s24 = scalar_select %p91_p1, %s847_s17, %s93_s22  }
   0x9   : > { %p918_p5 = por %p104_p2, %p103_p0  ;;  %p922_p6 = por %p110_p4, %p109_p3 }
   0xa   : > { %p662_p7 = scmp.ge.s32.totalorder %s851_s18, 1  ;;  %p169_p8 = scmp.lt.s32.totalorder %s851_s18, 3 }
   0xc   : > { %p170_p9 = pnand %p662_p7, %p169_p8 }
   0xd   : > { %s664_s7 = sshll.u32 (!%p170_p9), %s901_s19, 4  ;;  %s190_s6 = sand.u32 (!%p170_p9), 1, %s843_s16  }
   0xe   : > { %173 = sbr.rel (%p170_p9) target bundleno = 260 (0x104), region = 32  ;;  %p201_p10 = scmp.lt.s32.totalorder (!%p170_p9), %s664_s7, 31 }
   0xf   : > { %s663_s8 = sshll.u32 (!%p170_p9), %s190_s6, 7  ;;  %s809_s5 = scalar_lea.hbm (!%p170_p9), %s1201_s3, 256 }
  0x10   : > { %s1114_s12 = scalar_lea.vmem (!%p170_p9), [#allocation2], %s663_s8 }
  0x11   : > { %s565_s20 = sshll.u32 (!%p170_p9), %s1114_s12, 4  ;;  %s566_s20 = int_to_ptr.vmem [resolvable:$true] %s565_s20 }
  0x13   : > { %v243_v0 = vld [vmem:[%s1199_s1 + $0x70] sm:$0xff]  ;;  %v934_v1 = vld [vmem:[%s1200_s2 + $0x38] sm:$0xff]  ;;  %v241_v2 = vld [vmem:[%s1199_s1 + $0x60] sm:$0xff]  ;;  %s1210_s7 = smov (!%p201_p10, %s664_s7), 31  ;;  %vm245_vm0 = vcmask 523264   ;;  %vm529_vm1 = vcmask 31744  }
  0x14   : > { %724 = vmatpush.msra.mxu3 %v243_v0  ;;  %472 = vmatpush.msra.mxu2 %v934_v1  ;;  %v944_v3 = vld [vmem:[%s1200_s2 + $0x30] sm:$0xff]  ;;  %v244_v4 = vld [vmem:[%s1199_s1 + $0x78] sm:$0xff]  ;;  %v955_v6 = vld [vmem:[%s1200_s2 + $0x28] sm:$0xff]  ;;  %s665_s22 = sshll.u32 %s1210_s7, 3  ;;  %s723_s7 = sshll.u32 %s901_s19, 7 }
  0x15   : > { %302 = vmatpush.msra.mxu0 %v243_v0  ;;  %367 = vmatpush.msra.mxu1 %v244_v4  ;;  %v239_v5 = vld [vmem:[%s1199_s1 + $0x50] sm:$0xff]  ;;  %v242_v7 = vld [vmem:[%s1199_s1 + $0x68] sm:$0xff]  ;;  %v240_v8 = vld [vmem:[%s1199_s1 + $0x58] sm:$0xff]  ;;  %s1014_s13 = scalar_lea.vmem %s1198_s0, %s665_s22  ;;  %s1112_s11 = scalar_lea.vmem %s1202_s4, %s665_s22 }
  0x16   : > { %725 = vmatpush.msra.mxu3 %v241_v2  ;;  %473 = vmatpush.msra.mxu2 %v944_v3  ;;  %v237_v9 = vld [vmem:[%s1199_s1 + $0x40] sm:$0xff]  ;;  %v238_v11 = vld [vmem:[%s1199_s1 + $0x48] sm:$0xff]  ;;  %v235_v12 = vld [vmem:[%s1199_s1 + $0x30] sm:$0xff]  ;;  %s564_s14 = scalar_lea.hbm %s1201_s3, %s723_s7  ;;  %s547_s19 = scalar_lea.sflag [#allocation3], %s190_s6 }
  0x17   : > { %303 = vmatpush.msra.mxu0 %v241_v2  ;;  %368 = vmatpush.msra.mxu1 %v242_v7  ;;  %v972_v10 = vld [vmem:[%s1200_s2 + $0x20] sm:$0xff]  ;;  %v984_v13 = vld [vmem:[%s1200_s2 + $0x18] sm:$0xff]  ;;  %v997_v16 = vld [vmem:[%s1200_s2 + $0x10] sm:$0xff]  ;;  %s567_s23 = sshll.u32 %s564_s14, 4  ;;  %s568_s23 = int_to_ptr.hbm [resolvable:$true] %s567_s23 }
  0x18   : > { %726 = vmatpush.msra.mxu3 %v239_v5  ;;  %474 = vmatpush.msra.mxu2 %v955_v6  ;;  %v236_v14 = vld [vmem:[%s1199_s1 + $0x38] sm:$0xff]  ;;  %v233_v15 = vld [vmem:[%s1199_s1 + $0x20] sm:$0xff]  ;;  %v234_v17 = vld [vmem:[%s1199_s1 + $0x28] sm:$0xff]  ;;  %s803_s27 = sshra.s32 %s568_s23, 4  ;;  %s804_s27 = int_to_ptr.hbm [resolvable:$true] %s803_s27 }
  0x19   : > { %304 = vmatpush.msra.mxu0 %v239_v5  ;;  %369 = vmatpush.msra.mxu1 %v240_v8  ;;  %v231_v18 = vld [vmem:[%s1199_s1 + $0x10] sm:$0xff]  ;;  %v457_v19 = vld [vmem:[%s1200_s2 + $0x8] sm:$0xff]  ;;  %v232_v20 = vld [vmem:[%s1199_s1 + $0x18] sm:$0xff]  ;;  %s805_s28 = scalar_lea.hbm %s804_s27, 128  ;;  %p810_p0 = scmp.lt.s32.totalorder %s804_s27, %s1201_s3 }
  0x1a   : > { %727 = vmatpush.msra.mxu3 %v237_v9  ;;  %475 = vmatpush.msra.mxu2 %v972_v10  ;;  %v229_v21 = vld [vmem:[%s1199_s1] sm:$0xff]  ;;  %v230_v25 = vld [vmem:[%s1199_s1 + $0x8] sm:$0xff]  ;;  %v227_v28 = vld [vmem:[%s1014_s13 + $0x70] sm:$0xff]  ;;  %p806_p11 = scmp.ne.s32.totalorder %s804_s27, %s805_s28  ;;  %p811_p1 = scmp.lt.s32.totalorder %s809_s5, %s805_s28 }
  0x1b   : > { %305 = vmatpush.msra.mxu0 %v237_v9  ;;  %370 = vmatpush.msra.mxu1 %v238_v11  ;;  %v456_v22 = vld [vmem:[%s1200_s2] sm:$0xff]  ;;  %v226_v26 = vld [vmem:[%s1014_s13 + $0x68] sm:$0xff]  ;;  %v215_v29 = vld [vmem:[%s1014_s13 + $0x10] sm:$0xff] }
  0x1c   : > { %728 = vmatpush.msra.mxu3 %v235_v12  ;;  %476 = vmatpush.msra.mxu2 %v984_v13  ;;  %v1027_v23 = vld [vmem:[%s1014_s13 + $0x60] sm:$0xff]  ;;  %v214_v27 = vld [vmem:[%s1014_s13 + $0x8] sm:$0xff]  ;;  %v228_v30 = vld [vmem:[%s1014_s13 + $0x78] sm:$0xff]  ;;  %p807_p12 = pnand %p806_p11, %p918_p5  ;;  %p812_p2 = por %p811_p1, %p810_p0 }
  0x1d   : > { %306 = vmatpush.msra.mxu0 %v235_v12  ;;  %371 = vmatpush.msra.mxu1 %v236_v14  ;;  %v213_v24 = vld [vmem:[%s1014_s13] sm:$0xff]  ;;  %v216_v31 = vld [vmem:[%s1014_s13 + $0x18] sm:$0xff]  ;;  %v218_v33 = vld [vmem:[%s1014_s13 + $0x28] sm:$0xff] }
  0x1e   : > { %729 = vmatpush.msra.mxu3 %v233_v15  ;;  %477 = vmatpush.msra.mxu2 %v997_v16  ;;  %v217_v32 = vld [vmem:[%s1014_s13 + $0x20] sm:$0xff]  ;;  %v219_v34 = vld [vmem:[%s1014_s13 + $0x30] sm:$0xff]  ;;  %v220_v35 = vld [vmem:[%s1014_s13 + $0x38] sm:$0xff]  ;;  %p808_p13 = pneg %p807_p12 }
  0x1f   : > { %307 = vmatpush.msra.mxu0 %v233_v15  ;;  %372 = vmatpush.msra.mxu1 %v234_v17  ;;  %v221_v36 = vld [vmem:[%s1014_s13 + $0x40] sm:$0xff]  ;;  %v222_v37 = vld [vmem:[%s1014_s13 + $0x48] sm:$0xff]  ;;  %v223_v38 = vld [vmem:[%s1014_s13 + $0x50] sm:$0xff] }
  0x20   : > { %730 = vmatpush.msra.mxu3 %v231_v18  ;;  %478 = vmatpush.msra.mxu2 %v457_v19  ;;  %v224_v39 = vld [vmem:[%s1014_s13 + $0x58] sm:$0xff]  ;;  %p813_p3 = pnand %p812_p2, %p808_p13 }
  0x21   : > { %308 = vmatpush.msra.mxu0 %v231_v18  ;;  %373 = vmatpush.msra.mxu1 %v232_v20 }
  0x22   : > { %731 = vmatpush.msra.mxu3 %v229_v21  ;;  %479 = vmatpush.msra.mxu2 %v456_v22 }
  0x23   : > { %680 = vmatmul.msk.f32.vlgmr.msra.gmra.mxu3 %vm245_vm0, %v1027_v23  ;;  %700 = vmatmul.msk.f32.vlgmr.msra.gmra.mxu2 %vm245_vm0, %v213_v24 }
  0x24   : > { %732 = vmatpush.msrb.mxu3 %v244_v4  ;;  %309 = vmatpush.msra.mxu0 %v229_v21 }
  0x25   : > { %374 = vmatpush.msra.mxu1 %v230_v25  ;;  %668 = vmatmul.msk.f32.vlgmr.msra.gmra.mxu0 %vm245_vm0, %v213_v24 }
  0x26   : > { %684 = vmatmul.msk.f32.vlgmr.msra.gmra.mxu1 %vm245_vm0, %v213_v24  ;;  %733 = vmatpush.msrb.mxu3 %v242_v7 }
  0x28   : > { %734 = vmatpush.msrb.mxu3 %v240_v8 }
  0x2a   : > { %735 = vmatpush.msrb.mxu3 %v238_v11 }
  0x2b   : > { %681 = vmatmul.msk.f32.gmra.mxu3 %vm245_vm0, %v226_v26  ;;  %701 = vmatmul.msk.f32.gmra.mxu2 %vm245_vm0, %v214_v27 }
  0x2c   : > { %736 = vmatpush.msrb.mxu3 %v236_v14 }
  0x2d   : > { %669 = vmatmul.msk.f32.gmra.mxu0 %vm245_vm0, %v214_v27 }
  0x2e   : > { %685 = vmatmul.msk.f32.gmra.mxu1 %vm245_vm0, %v214_v27  ;;  %737 = vmatpush.msrb.mxu3 %v234_v17 }
  0x30   : > { %738 = vmatpush.msrb.mxu3 %v232_v20 }
  0x32   : > { %739 = vmatpush.msrb.mxu3 %v230_v25 }
  0x33   : > { %682 = vmatmul.msk.f32.gmra.mxu3 %vm245_vm0, %v227_v28  ;;  %702 = vmatmul.msk.f32.gmra.mxu2 %vm245_vm0, %v215_v29 }
  0x34   : > { %740 = vmatpush.msra.mxu3 %v934_v1 }
  0x35   : > { %670 = vmatmul.msk.f32.gmra.mxu0 %vm245_vm0, %v215_v29 }
  0x36   : > { %686 = vmatmul.msk.f32.gmra.mxu1 %vm245_vm0, %v215_v29  ;;  %741 = vmatpush.msra.mxu3 %v944_v3 }
  0x38   : > { %742 = vmatpush.msra.mxu3 %v955_v6 }
  0x3a   : > { %743 = vmatpush.msra.mxu3 %v972_v10 }
  0x3b   : > { %683 = vmatmul.msk.f32.gmra.mxu3 %vm245_vm0, %v228_v30  ;;  %703 = vmatmul.msk.f32.gmra.mxu2 %vm245_vm0, %v216_v31 }
  0x3c   : > { %744 = vmatpush.msra.mxu3 %v984_v13 }
  0x3d   : > { %671 = vmatmul.msk.f32.gmra.mxu0 %vm245_vm0, %v216_v31 }
  0x3e   : > { %687 = vmatmul.msk.f32.gmra.mxu1 %vm245_vm0, %v216_v31  ;;  %745 = vmatpush.msra.mxu3 %v997_v16 }
  0x40   : > { %746 = vmatpush.msra.mxu3 %v457_v19 }
  0x42   : > { %747 = vmatpush.msra.mxu3 %v456_v22 }
  0x43   : > { %696 = vmatmul.msk.f32.vlgmr.msrb.gmra.mxu3 %vm245_vm0, %v1027_v23  ;;  %704 = vmatmul.msk.f32.gmra.mxu2 %vm245_vm0, %v217_v32 }
  0x45   : > { %672 = vmatmul.msk.f32.gmra.mxu0 %vm245_vm0, %v217_v32 }
  0x46   : > { %688 = vmatmul.msk.f32.gmra.mxu1 %vm245_vm0, %v217_v32 }
  0x4b   : > { %697 = vmatmul.msk.f32.gmra.mxu3 %vm245_vm0, %v226_v26  ;;  %705 = vmatmul.msk.f32.gmra.mxu2 %vm245_vm0, %v218_v33 }
  0x4d   : > { %673 = vmatmul.msk.f32.gmra.mxu0 %vm245_vm0, %v218_v33 }
  0x4e   : > { %689 = vmatmul.msk.f32.gmra.mxu1 %vm245_vm0, %v218_v33 }
  0x53   : > { %698 = vmatmul.msk.f32.gmra.mxu3 %vm245_vm0, %v227_v28  ;;  %706 = vmatmul.msk.f32.gmra.mxu2 %vm245_vm0, %v219_v34 }
  0x55   : > { %674 = vmatmul.msk.f32.gmra.mxu0 %vm245_vm0, %v219_v34 }
  0x56   : > { %690 = vmatmul.msk.f32.gmra.mxu1 %vm245_vm0, %v219_v34 }
  0x5b   : > { %699 = vmatmul.msk.f32.gmra.mxu3 %vm245_vm0, %v228_v30  ;;  %707 = vmatmul.msk.f32.gmra.mxu2 %vm245_vm0, %v220_v35 }
  0x5d   : > { %675 = vmatmul.msk.f32.gmra.mxu0 %vm245_vm0, %v220_v35 }
  0x5e   : > { %691 = vmatmul.msk.f32.gmra.mxu1 %vm245_vm0, %v220_v35 }
  0x63   : > { %708 = vmatmul.msk.f32.gmra.mxu2 %vm245_vm0, %v221_v36  ;;  %712 = vmatmul.msk.f32.vlgmr.msra.gmra.mxu3 %vm245_vm0, %v1027_v23 }
  0x65   : > { %676 = vmatmul.msk.f32.gmra.mxu0 %vm245_vm0, %v221_v36 }
  0x66   : > { %692 = vmatmul.msk.f32.gmra.mxu1 %vm245_vm0, %v221_v36 }
  0x6b   : > { %709 = vmatmul.msk.f32.gmra.mxu2 %vm245_vm0, %v222_v37  ;;  %713 = vmatmul.msk.f32.gmra.mxu3 %vm245_vm0, %v226_v26 }
  0x6d   : > { %677 = vmatmul.msk.f32.gmra.mxu0 %vm245_vm0, %v222_v37 }
  0x6e   : > { %693 = vmatmul.msk.f32.gmra.mxu1 %vm245_vm0, %v222_v37 }
  0x73   : > { %710 = vmatmul.msk.f32.gmra.mxu2 %vm245_vm0, %v223_v38  ;;  %714 = vmatmul.msk.f32.gmra.mxu3 %vm245_vm0, %v227_v28 }
  0x75   : > { %678 = vmatmul.msk.f32.gmra.mxu0 %vm245_vm0, %v223_v38 }
  0x76   : > { %694 = vmatmul.msk.f32.gmra.mxu1 %vm245_vm0, %v223_v38 }
  0x7b   : > { %711 = vmatmul.msk.f32.gmra.mxu2 %vm245_vm0, %v224_v39  ;;  %715 = vmatmul.msk.f32.gmra.mxu3 %vm245_vm0, %v228_v30 }
  0x7d   : > { %679 = vmatmul.msk.f32.gmra.mxu0 %vm245_vm0, %v224_v39 }
  0x7e   : > { %695 = vmatmul.msk.f32.gmra.mxu1 %vm245_vm0, %v224_v39 }
  0xa2   : > { %v311_v40 = vpop.f32.mrf.mxu0 }
  0xa3   : > { %v376_v41 = vpop.f32.mrf.mxu1 }
  0xa4   : > { %v424_v42 = vpack.c.bf16 %v376_v41, %v311_v40 }
  0xa6   : > { %440 = vst [vmem:[%s1114_s12] sm:$0xff] %v424_v42  ;;  %v347_v43 = vpop.f32.mrf.mxu3  ;;  %v481_v44 = vpop.f32.mrf.mxu2 }
  0xa7   : > { %530 = vst.msk [vmem:[%s1112_s11] sm:$0xff] %vm529_vm1, %v481_v44 }
  0xaa   : > { %v314_v45 = vpop.f32.mrf.mxu0 }
  0xab   : > { %v379_v46 = vpop.f32.mrf.mxu1 }
  0xac   : > { %v425_v47 = vpack.c.bf16 %v379_v46, %v314_v45 }
  0xae   : > { %441 = vst [vmem:[%s1114_s12 + $0x8] sm:$0xff] %v425_v47  ;;  %v350_v48 = vpop.f32.mrf.mxu3  ;;  %v484_v49 = vpop.f32.mrf.mxu2 }
  0xaf   : > { %531 = vst.msk [vmem:[%s1112_s11 + $0x8] sm:$0xff] %vm529_vm1, %v484_v49 }
  0xb2   : > { %v317_v50 = vpop.f32.mrf.mxu0 }
  0xb3   : > { %v382_v51 = vpop.f32.mrf.mxu1 }
  0xb4   : > { %v426_v52 = vpack.c.bf16 %v382_v51, %v317_v50 }
  0xb6   : > { %442 = vst [vmem:[%s1114_s12 + $0x10] sm:$0xff] %v426_v52  ;;  %v353_v53 = vpop.f32.mrf.mxu3  ;;  %v487_v54 = vpop.f32.mrf.mxu2 }
  0xb7   : > { %532 = vst.msk [vmem:[%s1112_s11 + $0x10] sm:$0xff] %vm529_vm1, %v487_v54 }
  0xba   : > { %v320_v55 = vpop.f32.mrf.mxu0 }
  0xbb   : > { %v385_v56 = vpop.f32.mrf.mxu1 }
  0xbc   : > { %v427_v57 = vpack.c.bf16 %v385_v56, %v320_v55 }
  0xbe   : > { %443 = vst [vmem:[%s1114_s12 + $0x18] sm:$0xff] %v427_v57  ;;  %v356_v58 = vpop.f32.mrf.mxu3  ;;  %v490_v59 = vpop.f32.mrf.mxu2 }
  0xbf   : > { %533 = vst.msk [vmem:[%s1112_s11 + $0x18] sm:$0xff] %vm529_vm1, %v490_v59 }
  0xc2   : > { %v323_v60 = vpop.f32.mrf.mxu0 }
  0xc3   : > { %v388_v61 = vpop.f32.mrf.mxu1 }
  0xc4   : > { %v428_v62 = vpack.c.bf16 %v388_v61, %v323_v60 }
  0xc6   : > { %444 = vst [vmem:[%s1114_s12 + $0x20] sm:$0xff] %v428_v62  ;;  %v412_v63 = vpop.f32.mrf.mxu3  ;;  %v493_v0 = vpop.f32.mrf.mxu2 }
  0xc7   : > { %v436_v1 = vpack.c.bf16 %v412_v63, %v347_v43  ;;  %534 = vst.msk [vmem:[%s1112_s11 + $0x20] sm:$0xff] %vm529_vm1, %v493_v0 }
  0xc9   : > { %452 = vst [vmem:[%s1114_s12 + $0x60] sm:$0xff] %v436_v1 }
  0xca   : > { %v326_v2 = vpop.f32.mrf.mxu0 }
  0xcb   : > { %v391_v3 = vpop.f32.mrf.mxu1 }
  0xcc   : > { %v429_v4 = vpack.c.bf16 %v391_v3, %v326_v2 }
  0xce   : > { %445 = vst [vmem:[%s1114_s12 + $0x28] sm:$0xff] %v429_v4  ;;  %v415_v5 = vpop.f32.mrf.mxu3  ;;  %v496_v6 = vpop.f32.mrf.mxu2 }
  0xcf   : > { %v437_v7 = vpack.c.bf16 %v415_v5, %v350_v48  ;;  %535 = vst.msk [vmem:[%s1112_s11 + $0x28] sm:$0xff] %vm529_vm1, %v496_v6 }
  0xd1   : > { %453 = vst [vmem:[%s1114_s12 + $0x68] sm:$0xff] %v437_v7 }
  0xd2   : > { %v329_v8 = vpop.f32.mrf.mxu0 }
  0xd3   : > { %v394_v9 = vpop.f32.mrf.mxu1 }
  0xd4   : > { %v430_v10 = vpack.c.bf16 %v394_v9, %v329_v8 }
  0xd6   : > { %446 = vst [vmem:[%s1114_s12 + $0x30] sm:$0xff] %v430_v10  ;;  %v418_v11 = vpop.f32.mrf.mxu3  ;;  %v499_v12 = vpop.f32.mrf.mxu2 }
  0xd7   : > { %v438_v13 = vpack.c.bf16 %v418_v11, %v353_v53  ;;  %536 = vst.msk [vmem:[%s1112_s11 + $0x30] sm:$0xff] %vm529_vm1, %v499_v12 }
  0xd9   : > { %454 = vst [vmem:[%s1114_s12 + $0x70] sm:$0xff] %v438_v13 }
  0xda   : > { %v332_v14 = vpop.f32.mrf.mxu0 }
  0xdb   : > { %v397_v15 = vpop.f32.mrf.mxu1 }
  0xdc   : > { %v431_v16 = vpack.c.bf16 %v397_v15, %v332_v14 }
  0xde   : > { %447 = vst [vmem:[%s1114_s12 + $0x38] sm:$0xff] %v431_v16  ;;  %v421_v17 = vpop.f32.mrf.mxu3  ;;  %v502_v18 = vpop.f32.mrf.mxu2 }
  0xdf   : > { %v439_v19 = vpack.c.bf16 %v421_v17, %v356_v58  ;;  %537 = vst.msk [vmem:[%s1112_s11 + $0x38] sm:$0xff] %vm529_vm1, %v502_v18 }
  0xe1   : > { %455 = vst [vmem:[%s1114_s12 + $0x78] sm:$0xff] %v439_v19 }
  0xe2   : > { %v335_v20 = vpop.f32.mrf.mxu0 }
  0xe3   : > { %v400_v21 = vpop.f32.mrf.mxu1 }
  0xe4   : > { %v432_v22 = vpack.c.bf16 %v400_v21, %v335_v20 }
  0xe6   : > { %448 = vst [vmem:[%s1114_s12 + $0x40] sm:$0xff] %v432_v22  ;;  %v505_v23 = vpop.f32.mrf.mxu2  ;;  %v517_v24 = vpop.f32.mrf.mxu3 }
  0xe7   : > { %538 = vst.msk [vmem:[%s1112_s11 + $0x40] sm:$0xff] %vm529_vm1, %v505_v23 }
  0xe8   : > { %542 = vst.msk [vmem:[%s1112_s11 + $0x60] sm:$0xff] %vm529_vm1, %v517_v24 }
  0xea   : > { %v338_v25 = vpop.f32.mrf.mxu0 }
  0xeb   : > { %v403_v26 = vpop.f32.mrf.mxu1 }
  0xec   : > { %v433_v27 = vpack.c.bf16 %v403_v26, %v338_v25 }
  0xee   : > { %449 = vst [vmem:[%s1114_s12 + $0x48] sm:$0xff] %v433_v27  ;;  %v508_v28 = vpop.f32.mrf.mxu2  ;;  %v520_v29 = vpop.f32.mrf.mxu3 }
  0xef   : > { %539 = vst.msk [vmem:[%s1112_s11 + $0x48] sm:$0xff] %vm529_vm1, %v508_v28 }
  0xf0   : > { %543 = vst.msk [vmem:[%s1112_s11 + $0x68] sm:$0xff] %vm529_vm1, %v520_v29 }
  0xf2   : > { %v341_v30 = vpop.f32.mrf.mxu0 }
  0xf3   : > { %v406_v31 = vpop.f32.mrf.mxu1 }
  0xf4   : > { %v434_v32 = vpack.c.bf16 %v406_v31, %v341_v30 }
  0xf6   : > { %450 = vst [vmem:[%s1114_s12 + $0x50] sm:$0xff] %v434_v32  ;;  %v511_v33 = vpop.f32.mrf.mxu2  ;;  %v523_v34 = vpop.f32.mrf.mxu3 }
  0xf7   : > { %540 = vst.msk [vmem:[%s1112_s11 + $0x50] sm:$0xff] %vm529_vm1, %v511_v33 }
  0xf8   : > { %544 = vst.msk [vmem:[%s1112_s11 + $0x70] sm:$0xff] %vm529_vm1, %v523_v34 }
  0xfa   : > { %v344_v35 = vpop.f32.mrf.mxu0 }
  0xfb   : > { %v409_v36 = vpop.f32.mrf.mxu1 }
  0xfc   : > { %v435_v37 = vpack.c.bf16 %v409_v36, %v344_v35 }
  0xfe   : > { %451 = vst [vmem:[%s1114_s12 + $0x58] sm:$0xff] %v435_v37  ;;  %v514_v38 = vpop.f32.mrf.mxu2  ;;  %v526_v39 = vpop.f32.mrf.mxu3 }
  0xff   : > { %541 = vst.msk [vmem:[%s1112_s11 + $0x58] sm:$0xff] %vm529_vm1, %v514_v38 }
 0x100   : > { %545 = vst.msk [vmem:[%s1112_s11 + $0x78] sm:$0xff] %vm529_vm1, %v526_v39 }
 0x101   : > { %816 = shalt.err (!%p813_p3)
}
 0x102   : > { %s853_s6 = smov 128   ;;  %s854_s10 = smov 8  }
 0x103   : > { %748 = dma.vmem_to_hbm [thread:$0]  (%p918_p5), %s566_s20, 2048, %s568_s23, %s547_s19, %s853_s6, %s853_s6, %s854_s10  }
 0x104 PF: > { %p754_p4 = scmp.ge.s32.totalorder %s851_s18, 2  ;;  %s586_s11 = sand.u32 1, %s839_s15  }
 0x105   : > { %s587_s12 = scalar_lea.sflag [#allocation3], %s586_s11 }
 0x106   : > { %p751_p7 = pnand %p754_p4, %p922_p6 }
 0x108   : > { %p752_p8 = pneg %p751_p7 }
 0x10a   : > { %834 = dma.done.wait (%p752_p8), %s587_s12, 2048  }
 0x10b   : > { %836 = vsyncadd (%p752_p8), %s587_s12, 4294965248  ;;  %p15_p9 = scmp.ge.s32.totalorder %s905_s21, 4   ;;  %s1205_s15 = smov %s843_s16 }
 0x10c   : > { %s1206_s16 = smov %s847_s17  ;;  %s1207_s17 = smov %s916_s24 }
 0x10d   : > { %s1208_s18 = smov %s905_s21  ;;  %17 = sbr.rel (!%p15_p9) target bundleno = 3 (0x3), region = 79 }
 0x112   :  { %601 = vsyncpa [#allocation3], 1 }
 0x113   :  { %603 = vsyncpa [#allocation3 + $0x1], 1 }

</bundles_post_ra>
